<compile_context>
chip_gen: v5e
topology: v5e:2x2
jax: 0.10.0
libtpu: 0.0.40
codegen_flags: <defaults>
</compile_context>

<pallas_src>
import jax
import jax.numpy as jnp
from jax.experimental import pallas as pl
from jax.experimental.pallas import tpu as pltpu


# ---------------------------------------------------------------------------
# Kernel: stream fusion (shared weights applied to the base/aug rows of one
# stacked matmul) + pair subtraction + 3-layer classifier head.  grid = ().
# ---------------------------------------------------------------------------
def _dual_stream_kernel(
    x_ref,                      # (2B, total_dim) bf16: rows [0:B]=base, [B:2B]=aug
    wf_ref,                     # (total_dim, fusion_dim) bf16  (VMEM)
    bias_ref,                   # (1, fusion_dim+512+256+padded_out) f32 packed biases
    w1_hbm, w2_hbm, w3_hbm,     # classifier weights, bf16, left in HBM (pl.ANY)
    out_ref,                    # (B, padded_out) f32, lane-dense
    w1_vmem, w2_vmem, w3_vmem,  # VMEM scratch buffers for classifier weights
    sem,                        # DMA semaphores (3,)
):
    f32 = jnp.float32
    bf16 = jnp.bfloat16
    B = out_ref.shape[0]

    fusion_dim = wf_ref.shape[1]
    h1_dim = w1_vmem.shape[1]
    h2_dim = w2_vmem.shape[1]
    padded_out = w3_vmem.shape[1]
    o1 = fusion_dim
    o2 = o1 + h1_dim
    o3 = o2 + h2_dim

    # Kick off classifier-weight fetches so they overlap the fusion matmul.
    cp1 = pltpu.make_async_copy(w1_hbm, w1_vmem, sem.at[0]); cp1.start()
    cp2 = pltpu.make_async_copy(w2_hbm, w2_vmem, sem.at[1]); cp2.start()
    cp3 = pltpu.make_async_copy(w3_hbm, w3_vmem, sem.at[2]); cp3.start()

    # StreamFusion('concat'): Linear -> ReLU -> Dropout(eval = identity),
    # applied to base and aug rows in ONE stacked matmul.
    z = (jnp.dot(x_ref[...], wf_ref[...], preferred_element_type=f32)
         + bias_ref[0:1, 0:o1])
    fused = jnp.maximum(z, 0.0)                      # (2B, fusion_dim) f32

    # combine_pair_embeddings('subtract'): aug - base
    combined = fused[B:2 * B, :] - fused[0:B, :]     # (B, fusion_dim) f32

    # classifier: Linear(512) -> ReLU -> Linear(256) -> ReLU -> Linear(padded_out)
    cp1.wait()
    h1 = jnp.maximum(
        jnp.dot(combined.astype(bf16), w1_vmem[...], preferred_element_type=f32)
        + bias_ref[0:1, o1:o2], 0.0)
    cp2.wait()
    h2 = jnp.maximum(
        jnp.dot(h1.astype(bf16), w2_vmem[...], preferred_element_type=f32)
        + bias_ref[0:1, o2:o3], 0.0)
    cp3.wait()
    out_ref[...] = (
        jnp.dot(h2.astype(bf16), w3_vmem[...], preferred_element_type=f32)
        + bias_ref[0:1, o3:o3 + padded_out])


def dual_stream_classifier(base_streams, aug_streams, params):
    """base_streams / aug_streams: lists of (B, d_i) stream embeddings."""
    B = base_streams[0].shape[0]
    total_dim = sum(s.shape[1] for s in base_streams)
    wf = params["wf"]
    w1, w2, w3 = params["w1"], params["w2"], params["w3"]
    fusion_dim = wf.shape[1]
    padded_out = w3.shape[1]
    num_classes = params["num_classes"]
    assert wf.shape[0] == total_dim, "stream dims must sum to fusion fan-in"
    assert padded_out >= num_classes

    # Pre-concat streams (pure layout plumbing): rows [0:B]=base, [B:2B]=aug.
    x = jnp.concatenate(
        [jnp.concatenate(base_streams, axis=-1),
         jnp.concatenate(aug_streams, axis=-1)], axis=0).astype(jnp.bfloat16)

    flops = 2 * (2 * B * total_dim * fusion_dim
                 + B * (fusion_dim * w1.shape[1]
                        + w2.shape[0] * w2.shape[1]
                        + w3.shape[0] * padded_out))
    bytes_accessed = (x.size * 2 + wf.size * 2 + params["bias"].size * 4
                      + w1.size * 2 + w2.size * 2 + w3.size * 2
                      + B * padded_out * 4)

    vmem_spec = pl.BlockSpec(memory_space=pltpu.MemorySpace.VMEM)
    hbm_spec = pl.BlockSpec(memory_space=pl.ANY)

    out_padded = pl.pallas_call(
        _dual_stream_kernel,
        out_shape=jax.ShapeDtypeStruct((B, padded_out), jnp.float32),
        in_specs=[vmem_spec, vmem_spec, vmem_spec, hbm_spec, hbm_spec, hbm_spec],
        out_specs=vmem_spec,
        scratch_shapes=[
            pltpu.VMEM(w1.shape, w1.dtype),
            pltpu.VMEM(w2.shape, w2.dtype),
            pltpu.VMEM(w3.shape, w3.dtype),
            pltpu.SemaphoreType.DMA((3,)),
        ],
        cost_estimate=pl.CostEstimate(
            flops=flops, transcendentals=0, bytes_accessed=bytes_accessed),
    )(x, wf, params["bias"], w1, w2, w3)
    return out_padded[:, :num_classes]


# ---------------------------------------------------------------------------
# Deterministic parameter initialization (PyTorch nn.Linear default U(-k, k),
# k = 1/sqrt(fan_in)).  Weights stored transposed vs. torch, i.e. (in, out),
# cast to bf16 for HBM/MXU; biases kept f32 and packed into one lane slab.
# Final layer zero-padded to 128 output lanes.
# ---------------------------------------------------------------------------
def _linear_params(key, fan_in, fan_out):
    kw, kb = jax.random.split(key)
    bound = 1.0 / jnp.sqrt(float(fan_in))
    w = jax.random.uniform(kw, (fan_in, fan_out), jnp.float32, -bound, bound)
    b = jax.random.uniform(kb, (1, fan_out), jnp.float32, -bound, bound)
    return w, b


def init_params(key, stream_dims, fusion_dim, num_classes, padded_classes=128):
    total_dim = sum(stream_dims)
    k0, k1, k2, k3 = jax.random.split(key, 4)
    wf, bf = _linear_params(k0, total_dim, fusion_dim)
    w1, b1 = _linear_params(k1, fusion_dim, 512)
    w2, b2 = _linear_params(k2, 512, 256)
    w3, b3 = _linear_params(k3, 256, num_classes)

    w3p = jnp.zeros((256, padded_classes), jnp.float32).at[:, :num_classes].set(w3)
    b3p = jnp.zeros((1, padded_classes), jnp.float32).at[:, :num_classes].set(b3)

    bf16 = jnp.bfloat16
    bias_slab = jnp.concatenate([bf, b1, b2, b3p], axis=-1)   # (1, 1024) f32
    return dict(
        wf=wf.astype(bf16),
        w1=w1.astype(bf16),
        w2=w2.astype(bf16),
        w3=w3p.astype(bf16),
        bias=bias_slab,
        num_classes=num_classes,
        fusion_dim=fusion_dim,
    )


def _reference(base_streams, aug_streams, p):
    """Pure-JAX reference of the same (bf16-weight, bf16-activation-in) forward."""
    f32 = jnp.float32
    bf16 = jnp.bfloat16
    fd = p["fusion_dim"]
    bfb = p["bias"][:, 0:fd]
    b1 = p["bias"][:, fd:fd + 512]
    b2 = p["bias"][:, fd + 512:fd + 768]
    b3 = p["bias"][:, fd + 768:]

    def fuse(streams):
        x = jnp.concatenate(streams, axis=-1).astype(bf16)
        z = jnp.dot(x, p["wf"], preferred_element_type=f32) + bfb
        return jnp.maximum(z, 0.0)

    d = fuse(aug_streams) - fuse(base_streams)          # aug - base ('subtract')
    h1 = jnp.maximum(
        jnp.dot(d.astype(bf16), p["w1"], preferred_element_type=f32) + b1, 0.0)
    h2 = jnp.maximum(
        jnp.dot(h1.astype(bf16), p["w2"], preferred_element_type=f32) + b2, 0.0)
    out = jnp.dot(h2.astype(bf16), p["w3"], preferred_element_type=f32) + b3
    return out[:, :p["num_classes"]]


if __name__ == "__main__":
    B = 2
    num_classes = 5
    plane_embed_dim = 32   # embedding_dim with plane_fusion='sum'
    mlp_base_dim = 32
    mlp_head_dim = 64
    stream_dims = [plane_embed_dim, mlp_base_dim, mlp_head_dim]
    fusion_dim = 128

    key = jax.random.PRNGKey(0)
    k_param, k_b0, k_b1, k_b2, k_a0, k_a1, k_a2 = jax.random.split(key, 7)

    params = init_params(k_param, stream_dims, fusion_dim, num_classes)

    # Per-stream embeddings (stand-ins for plane / MLP encoder outputs).
    base_streams = [
        jax.random.normal(k_b0, (B, plane_embed_dim), jnp.float32),
        jax.random.normal(k_b1, (B, mlp_base_dim), jnp.float32),
        jax.random.normal(k_b2, (B, mlp_head_dim), jnp.float32),
    ]
    aug_streams = [
        jax.random.normal(k_a0, (B, plane_embed_dim), jnp.float32),
        jax.random.normal(k_a1, (B, mlp_base_dim), jnp.float32),
        jax.random.normal(k_a2, (B, mlp_head_dim), jnp.float32),
    ]

    logits = dual_stream_classifier(base_streams, aug_streams, params)
    logits = jax.block_until_ready(logits)

    ref = _reference(base_streams, aug_streams, params)
    assert logits.shape == (B, num_classes)
    assert jnp.allclose(logits, ref, atol=1e-2, rtol=1e-2)

    print("KERNEL_OK")
</pallas_src>

<mosaic_0001>
module attributes {stable_mosaic.version = 11 : i64} {
  func.func @_dual_stream_kernel(%arg0: memref<4x128xbf16, #tpu.memory_space<vmem>>, %arg1: memref<128x128xbf16, #tpu.memory_space<vmem>>, %arg2: memref<1x1024xf32, #tpu.memory_space<vmem>>, %arg3: memref<128x512xbf16, #tpu.memory_space<any>>, %arg4: memref<512x256xbf16, #tpu.memory_space<any>>, %arg5: memref<256x128xbf16, #tpu.memory_space<any>>, %arg6: memref<2x128xf32, #tpu.memory_space<vmem>>, %arg7: memref<128x512xbf16, #tpu.memory_space<vmem>>, %arg8: memref<512x256xbf16, #tpu.memory_space<vmem>>, %arg9: memref<256x128xbf16, #tpu.memory_space<vmem>>, %arg10: memref<3x!tpu.dma_semaphore, #tpu.memory_space<semaphore_mem>>) attributes {dimension_semantics = [], scalar_prefetch = 0 : i64, scratch_operands = 4 : i64, tpu.core_type = #tpu.core_type<tc>} {
    %c0_i32 = arith.constant 0 : i32
    %0 = tpu.memref_slice %arg10[%c0_i32] : memref<3x!tpu.dma_semaphore, #tpu.memory_space<semaphore_mem>> -> memref<1x!tpu.dma_semaphore, #tpu.memory_space<semaphore_mem>>
    %1 = tpu.memref_squeeze %0 : memref<1x!tpu.dma_semaphore, #tpu.memory_space<semaphore_mem>> -> memref<!tpu.dma_semaphore, #tpu.memory_space<semaphore_mem>>
    tpu.enqueue_dma source(%arg3 : memref<128x512xbf16, #tpu.memory_space<any>>) target(%arg7 : memref<128x512xbf16, #tpu.memory_space<vmem>>) target_semaphore(%1 : memref<!tpu.dma_semaphore, #tpu.memory_space<semaphore_mem>>)
    %c1_i32 = arith.constant 1 : i32
    %2 = tpu.memref_slice %arg10[%c1_i32] : memref<3x!tpu.dma_semaphore, #tpu.memory_space<semaphore_mem>> -> memref<1x!tpu.dma_semaphore, #tpu.memory_space<semaphore_mem>>
    %3 = tpu.memref_squeeze %2 : memref<1x!tpu.dma_semaphore, #tpu.memory_space<semaphore_mem>> -> memref<!tpu.dma_semaphore, #tpu.memory_space<semaphore_mem>>
    tpu.enqueue_dma source(%arg4 : memref<512x256xbf16, #tpu.memory_space<any>>) target(%arg8 : memref<512x256xbf16, #tpu.memory_space<vmem>>) target_semaphore(%3 : memref<!tpu.dma_semaphore, #tpu.memory_space<semaphore_mem>>)
    %c2_i32 = arith.constant 2 : i32
    %4 = tpu.memref_slice %arg10[%c2_i32] : memref<3x!tpu.dma_semaphore, #tpu.memory_space<semaphore_mem>> -> memref<1x!tpu.dma_semaphore, #tpu.memory_space<semaphore_mem>>
    %5 = tpu.memref_squeeze %4 : memref<1x!tpu.dma_semaphore, #tpu.memory_space<semaphore_mem>> -> memref<!tpu.dma_semaphore, #tpu.memory_space<semaphore_mem>>
    tpu.enqueue_dma source(%arg5 : memref<256x128xbf16, #tpu.memory_space<any>>) target(%arg9 : memref<256x128xbf16, #tpu.memory_space<vmem>>) target_semaphore(%5 : memref<!tpu.dma_semaphore, #tpu.memory_space<semaphore_mem>>)
    %c0 = arith.constant 0 : index
    %c0_0 = arith.constant 0 : index
    %6 = vector.load %arg0[%c0, %c0_0] : memref<4x128xbf16, #tpu.memory_space<vmem>>, vector<4x128xbf16>
    %c0_1 = arith.constant 0 : index
    %c0_2 = arith.constant 0 : index
    %7 = vector.load %arg1[%c0_1, %c0_2] : memref<128x128xbf16, #tpu.memory_space<vmem>>, vector<128x128xbf16>
    %cst = arith.constant dense<0.000000e+00> : vector<4x128xf32>
    %8 = tpu.matmul %6, %7, %cst {dimension_numbers = #tpu.dot_dimension_numbers<[1], [0], [0], [1], [0, 0, 1, 1], [], []>} : vector<4x128xbf16>, vector<128x128xbf16>, vector<4x128xf32> -> vector<4x128xf32>
    %c0_3 = arith.constant 0 : index
    %c0_4 = arith.constant 0 : index
    %9 = vector.load %arg2[%c0_3, %c0_4] : memref<1x1024xf32, #tpu.memory_space<vmem>>, vector<1x128xf32>
    %10 = vector.broadcast %9 : vector<1x128xf32> to vector<4x128xf32>
    %11 = arith.addf %8, %10 : vector<4x128xf32>
    %cst_5 = arith.constant 0.000000e+00 : f32
    %12 = vector.broadcast %cst_5 : f32 to vector<4x128xf32>
    %13 = arith.maximumf %11, %12 : vector<4x128xf32>
    %14 = vector.extract_strided_slice %13 {offsets = [2, 0], sizes = [2, 128], strides = [1, 1]} : vector<4x128xf32> to vector<2x128xf32>
    %15 = vector.extract_strided_slice %13 {offsets = [0, 0], sizes = [2, 128], strides = [1, 1]} : vector<4x128xf32> to vector<2x128xf32>
    %16 = arith.subf %14, %15 : vector<2x128xf32>
    %c0_i32_6 = arith.constant 0 : i32
    %17 = tpu.memref_slice %arg10[%c0_i32_6] : memref<3x!tpu.dma_semaphore, #tpu.memory_space<semaphore_mem>> -> memref<1x!tpu.dma_semaphore, #tpu.memory_space<semaphore_mem>>
    %18 = tpu.memref_squeeze %17 : memref<1x!tpu.dma_semaphore, #tpu.memory_space<semaphore_mem>> -> memref<!tpu.dma_semaphore, #tpu.memory_space<semaphore_mem>>
    tpu.wait_dma2 semaphore(%18 : memref<!tpu.dma_semaphore, #tpu.memory_space<semaphore_mem>>) src(%arg3 : memref<128x512xbf16, #tpu.memory_space<any>>) dst(%arg7 : memref<128x512xbf16, #tpu.memory_space<vmem>>)
    %19 = arith.truncf %16 : vector<2x128xf32> to vector<2x128xbf16>
    %c0_7 = arith.constant 0 : index
    %c0_8 = arith.constant 0 : index
    %20 = vector.load %arg7[%c0_7, %c0_8] : memref<128x512xbf16, #tpu.memory_space<vmem>>, vector<128x512xbf16>
    %cst_9 = arith.constant dense<0.000000e+00> : vector<2x512xf32>
    %21 = tpu.matmul %19, %20, %cst_9 {dimension_numbers = #tpu.dot_dimension_numbers<[1], [0], [0], [1], [0, 0, 1, 1], [], []>} : vector<2x128xbf16>, vector<128x512xbf16>, vector<2x512xf32> -> vector<2x512xf32>
    %c0_10 = arith.constant 0 : index
    %c128 = arith.constant 128 : index
    %22 = vector.load %arg2[%c0_10, %c128] : memref<1x1024xf32, #tpu.memory_space<vmem>>, vector<1x512xf32>
    %23 = vector.broadcast %22 : vector<1x512xf32> to vector<2x512xf32>
    %24 = arith.addf %21, %23 : vector<2x512xf32>
    %cst_11 = arith.constant 0.000000e+00 : f32
    %25 = vector.broadcast %cst_11 : f32 to vector<2x512xf32>
    %26 = arith.maximumf %24, %25 : vector<2x512xf32>
    %c1_i32_12 = arith.constant 1 : i32
    %27 = tpu.memref_slice %arg10[%c1_i32_12] : memref<3x!tpu.dma_semaphore, #tpu.memory_space<semaphore_mem>> -> memref<1x!tpu.dma_semaphore, #tpu.memory_space<semaphore_mem>>
    %28 = tpu.memref_squeeze %27 : memref<1x!tpu.dma_semaphore, #tpu.memory_space<semaphore_mem>> -> memref<!tpu.dma_semaphore, #tpu.memory_space<semaphore_mem>>
    tpu.wait_dma2 semaphore(%28 : memref<!tpu.dma_semaphore, #tpu.memory_space<semaphore_mem>>) src(%arg4 : memref<512x256xbf16, #tpu.memory_space<any>>) dst(%arg8 : memref<512x256xbf16, #tpu.memory_space<vmem>>)
    %29 = arith.truncf %26 : vector<2x512xf32> to vector<2x512xbf16>
    %c0_13 = arith.constant 0 : index
    %c0_14 = arith.constant 0 : index
    %30 = vector.load %arg8[%c0_13, %c0_14] : memref<512x256xbf16, #tpu.memory_space<vmem>>, vector<512x256xbf16>
    %cst_15 = arith.constant dense<0.000000e+00> : vector<2x256xf32>
    %31 = tpu.matmul %29, %30, %cst_15 {dimension_numbers = #tpu.dot_dimension_numbers<[1], [0], [0], [1], [0, 0, 1, 1], [], []>} : vector<2x512xbf16>, vector<512x256xbf16>, vector<2x256xf32> -> vector<2x256xf32>
    %c0_16 = arith.constant 0 : index
    %c640 = arith.constant 640 : index
    %32 = vector.load %arg2[%c0_16, %c640] : memref<1x1024xf32, #tpu.memory_space<vmem>>, vector<1x256xf32>
    %33 = vector.broadcast %32 : vector<1x256xf32> to vector<2x256xf32>
    %34 = arith.addf %31, %33 : vector<2x256xf32>
    %cst_17 = arith.constant 0.000000e+00 : f32
    %35 = vector.broadcast %cst_17 : f32 to vector<2x256xf32>
    %36 = arith.maximumf %34, %35 : vector<2x256xf32>
    %c2_i32_18 = arith.constant 2 : i32
    %37 = tpu.memref_slice %arg10[%c2_i32_18] : memref<3x!tpu.dma_semaphore, #tpu.memory_space<semaphore_mem>> -> memref<1x!tpu.dma_semaphore, #tpu.memory_space<semaphore_mem>>
    %38 = tpu.memref_squeeze %37 : memref<1x!tpu.dma_semaphore, #tpu.memory_space<semaphore_mem>> -> memref<!tpu.dma_semaphore, #tpu.memory_space<semaphore_mem>>
    tpu.wait_dma2 semaphore(%38 : memref<!tpu.dma_semaphore, #tpu.memory_space<semaphore_mem>>) src(%arg5 : memref<256x128xbf16, #tpu.memory_space<any>>) dst(%arg9 : memref<256x128xbf16, #tpu.memory_space<vmem>>)
    %39 = arith.truncf %36 : vector<2x256xf32> to vector<2x256xbf16>
    %c0_19 = arith.constant 0 : index
    %c0_20 = arith.constant 0 : index
    %40 = vector.load %arg9[%c0_19, %c0_20] : memref<256x128xbf16, #tpu.memory_space<vmem>>, vector<256x128xbf16>
    %cst_21 = arith.constant dense<0.000000e+00> : vector<2x128xf32>
    %41 = tpu.matmul %39, %40, %cst_21 {dimension_numbers = #tpu.dot_dimension_numbers<[1], [0], [0], [1], [0, 0, 1, 1], [], []>} : vector<2x256xbf16>, vector<256x128xbf16>, vector<2x128xf32> -> vector<2x128xf32>
    %c0_22 = arith.constant 0 : index
    %c896 = arith.constant 896 : index
    %42 = vector.load %arg2[%c0_22, %c896] : memref<1x1024xf32, #tpu.memory_space<vmem>>, vector<1x128xf32>
    %43 = vector.broadcast %42 : vector<1x128xf32> to vector<2x128xf32>
    %44 = arith.addf %41, %43 : vector<2x128xf32>
    %c0_23 = arith.constant 0 : index
    %c0_24 = arith.constant 0 : index
    %45 = vector.load %arg6[%c0_23, %c0_24] : memref<2x128xf32, #tpu.memory_space<vmem>>, vector<2x128xf32>
    tpu.vector_store %arg6[%c0_23, %c0_24], %44 {strides = array<i32>} : memref<2x128xf32, #tpu.memory_space<vmem>>, vector<2x128xf32>,
    return
  }
}

</mosaic_0001>

<bundles_post_ra>
// kernel: tpu_custom_call.1
= control target key start
LH: loop header
LB: loop body
LE: loop exit
PB: predicated region body
PF: predicated region fallthrough
CT: control target
= control target key end

     0   :  { %11 = vsyncpa [#allocation7], 0  ;;  %s2065_s0 = inlined_call_operand.hbm [shape: bf16[4,128], index: 0, kind: input, shape index: {}]   ;;  %s2066_s1 = inlined_call_operand.hbm [shape: bf16[128,128], index: 1, kind: input, shape index: {}]   ;;  %s2067_s2 = inlined_call_operand.hbm [shape: f32[1,1024], index: 2, kind: input, shape index: {}]   ;;  %s2068_s3 = inlined_call_operand.hbm [shape: bf16[128,512], index: 3, kind: input, shape index: {}]   ;;  %s2069_s4 = inlined_call_operand.hbm [shape: bf16[512,256], index: 4, kind: input, shape index: {}]   ;;  %s2070_s5 = inlined_call_operand.hbm [shape: bf16[256,128], index: 5, kind: input, shape index: {}]   ;;  %s2071_s6 = inlined_call_operand.hbm [shape: f32[2,128], index: 6, kind: output, shape index: {}]  }
   0x1   :  { %12 = vsyncpa [#allocation10], 0  ;;  %s29_s23 = sshll.u32 %s2066_s1, 4  ;;  %s30_s23 = int_to_ptr.hbm [resolvable:$true] %s29_s23 }
   0x2   :  { %13 = vsyncpa [#allocation8], 0  ;;  %s1956_s24 = smov [#allocation9]   ;;  %s19_s28 = sshll.u32 %s2065_s0, 4  ;;  %s20_s28 = int_to_ptr.hbm [resolvable:$true] %s19_s28 }
   0x3   :  { %s31_s25 = sshll.u32 %s1956_s24, 4  ;;  %s1957_s29 = smov 64   ;;  %s32_s25 = int_to_ptr.vmem [resolvable:$true] %s31_s25 }
   0x4   :  { %s1958_s30 = smov 4   ;;  %s1959_s7 = smov [#allocation6]  }
   0x5   :  { %37 = dma.hbm_to_vmem [thread:$0]  %s30_s23, 1024, %s32_s25, [#allocation10], %s1957_s29, %s1957_s29, %s1958_s30  }
   0x6   :  { %s21_s8 = sshll.u32 %s1959_s7, 4  ;;  %s43_s11 = sshll.u32 %s2067_s2, 4  ;;  %s22_s8 = int_to_ptr.vmem [resolvable:$true] %s21_s8  ;;  %s44_s11 = int_to_ptr.hbm [resolvable:$true] %s43_s11 }
   0x7   :  { %24 = dma.hbm_to_vmem [thread:$0]  %s20_s28, 32, %s22_s8, [#allocation7]  }
   0x8   :  { %s1960_s1 = smov [#allocation11]  }
   0x9   :  { %s45_s12 = sshll.u32 %s1960_s1, 4  ;;  %s46_s12 = int_to_ptr.vmem [resolvable:$true] %s45_s12 }
   0xa   :  { %48 = dma.hbm_to_vmem [thread:$0]  %s44_s11, 128, %s46_s12, [#allocation10]  }
   0xb   :  { %1944 = dma.done.wait [#allocation7], 32  }
   0xc   :  { %1945 = vsyncadd [#allocation7], 4294967264 }
   0xd   :  { %1946 = dma.done.wait [#allocation10], 1152  }
   0xe   :  { %1947 = vsyncadd [#allocation10], 4294966144  ;;  %v1652_v0 = vld [vmem:[#allocation9 + $0x38] sm:$0xff]  ;;  %v1651_v1 = vld [vmem:[#allocation9 + $0x30] sm:$0xff]  ;;  %s68_s13 = sshll.u32 %s2068_s3, 4  ;;  %s1961_s14 = smov [#allocation2]   ;;  %s69_s13 = int_to_ptr.hbm [resolvable:$true] %s68_s13 }
   0xf   :  { %171 = vmatpush.bf16.msra.mxu0 %v1652_v0  ;;  %v1650_v2 = vld [vmem:[#allocation9 + $0x28] sm:$0xff]  ;;  %v1649_v3 = vld [vmem:[#allocation9 + $0x20] sm:$0xff]  ;;  %v1648_v4 = vld [vmem:[#allocation9 + $0x18] sm:$0xff]  ;;  %s70_s15 = sshll.u32 %s1961_s14, 4  ;;  %s82_s18 = sshll.u32 %s2069_s4, 4  ;;  %s71_s15 = int_to_ptr.vmem [resolvable:$true] %s70_s15  ;;  %s83_s18 = int_to_ptr.hbm [resolvable:$true] %s82_s18 }
  0x10   :  { %v1647_v5 = vld [vmem:[#allocation9 + $0x10] sm:$0xff]  ;;  %v1646_v6 = vld [vmem:[#allocation9 + $0x8] sm:$0xff]  ;;  %v1645_v7 = vld [vmem:[#allocation9] sm:$0xff]  ;;  %73 = dma.hbm_to_vmem [thread:$0]  %s69_s13, 4096, %s71_s15, [#allocation5] }
  0x11   :  { %v102_v8 = vld [vmem:[#allocation6] sm:$0x3]  ;;  %s1962_s19 = smov [#allocation3]   ;;  %s96_s23 = sshll.u32 %s2070_s5, 4  ;;  %v1774_v9 = vld [vmem:[#allocation11] ss:$0 sm:$0xff]  ;;  %s97_s23 = int_to_ptr.hbm [resolvable:$true] %s96_s23 }
  0x12   :  { %s84_s20 = sshll.u32 %s1962_s19, 4  ;;  %s1963_s3 = smov [#allocation4]   ;;  %s85_s20 = int_to_ptr.vmem [resolvable:$true] %s84_s20 }
  0x13   :  { %172 = vmatpush.bf16.msra.mxu0 %v1651_v1  ;;  %87 = dma.hbm_to_vmem [thread:$0]  %s83_s18, 8192, %s85_s20, [#allocation5 + $0x1] }
  0x14   :  { %s98_s24 = sshll.u32 %s1963_s3, 4  ;;  %s99_s24 = int_to_ptr.vmem [resolvable:$true] %s98_s24 }
  0x15   :  { %101 = dma.hbm_to_vmem [thread:$0]  %s97_s23, 2048, %s99_s24, [#allocation5 + $0x2] }
  0x17   :  { %173 = vmatpush.bf16.msra.mxu0 %v1650_v2 }
  0x1b   :  { %174 = vmatpush.bf16.msra.mxu0 %v1649_v3 }
  0x1f   :  { %175 = vmatpush.bf16.msra.mxu0 %v1648_v4 }
  0x23   :  { %176 = vmatpush.bf16.msra.mxu0 %v1647_v5 }
  0x27   :  { %177 = vmatpush.bf16.msra.mxu0 %v1646_v6 }
  0x2b   :  { %178 = vmatpush.bf16.msra.mxu0 %v1645_v7 }
  0x2e   :  { %179 = vmatmul.bf16.vlgmr.msra.gmra.mxu0 %v102_v8 }
  0xab   :  { %v180_v10 = vpop.f32.mrf.mxu0 }
  0xac   :  { %v181_v11 = vadd.f32 %v1774_v9, %v180_v10 }
  0xae   :  { %v184_v12 = vmax.f32 %v181_v11, 0.0 }
  0xb0   :  { %v186_v13 = vrot.slane %v184_v12, 6 }
  0xb2   :  { %v2018_v14 = vsub.f32 %v184_v12, %v186_v13 }
  0xb3   :  { %v182_v15 = vpop.f32.mrf.mxu0 }
  0xb4   :  { %1948 = dma.done.wait [#allocation5], 4096 }
  0xb5   :  { %1949 = vsyncadd [#allocation5], 4294963200  ;;  %v1308_v16 = vld [vmem:[#allocation2 + $0xe0] sm:$0xf]  ;;  %v1683_v17 = vld [vmem:[#allocation2 + $0xec] sm:$0xf0] }
  0xb6   :  { %v1681_v18 = vld [vmem:[#allocation2 + $0xe4] sm:$0xf]  ;;  %v1309_v19 = vor.u32 %v1683_v17, %v1308_v16  ;;  %v1310_v20 = vld [vmem:[#allocation2 + $0xf0] sm:$0xf0]  ;;  %v1316_v21 = vld [vmem:[#allocation2 + $0xe8] sm:$0xf] }
  0xb7   :  { %v1684_v22 = vld [vmem:[#allocation2 + $0xf4] sm:$0xf0]  ;;  %v1313_v23 = vor.u32 %v1681_v18, %v1310_v20  ;;  %v1682_v25 = vld [vmem:[#allocation2 + $0xec] sm:$0xf]  ;;  %v1318_v26 = vld [vmem:[#allocation2 + $0xf8] sm:$0xf0] }
  0xb8   :  { %v1317_v24 = vor.u32 %v1684_v22, %v1316_v21  ;;  %v1292_v27 = vld [vmem:[#allocation2 + $0xc0] sm:$0xf]  ;;  %399 = vmatpush.bf16.msra.mxu1 %v1309_v19  ;;  %v1321_v28 = vor.u32 %v1682_v25, %v1318_v26  ;;  %v1679_v29 = vld [vmem:[#allocation2 + $0xcc] sm:$0xf0]  ;;  %v1677_v30 = vld [vmem:[#allocation2 + $0xc4] sm:$0xf] }
  0xb9   :  { %v1294_v31 = vld [vmem:[#allocation2 + $0xd0] sm:$0xf0]  ;;  %412 = vmatpush.bf16.msra.mxu2 %v1313_v23  ;;  %v1293_v32 = vor.u32 %v1679_v29, %v1292_v27  ;;  %v1300_v34 = vld [vmem:[#allocation2 + $0xc8] sm:$0xf]  ;;  %v1680_v35 = vld [vmem:[#allocation2 + $0xd4] sm:$0xf0] }
  0xba   :  { %425 = vmatpush.bf16.msra.mxu3 %v1317_v24  ;;  %v1297_v33 = vor.u32 %v1677_v30, %v1294_v31  ;;  %v1678_v36 = vld [vmem:[#allocation2 + $0xcc] sm:$0xf]  ;;  %438 = vmatpush.bf16.msrb.mxu0 %v1321_v28  ;;  %v1301_v37 = vor.u32 %v1680_v35, %v1300_v34  ;;  %v1302_v38 = vld [vmem:[#allocation2 + $0xd8] sm:$0xf0]  ;;  %v1276_v39 = vld [vmem:[#allocation2 + $0xa0] sm:$0xf] }
  0xbb   :  { %v1675_v40 = vld [vmem:[#allocation2 + $0xac] sm:$0xf0]  ;;  %v1305_v41 = vor.u32 %v1678_v36, %v1302_v38  ;;  %v1673_v42 = vld [vmem:[#allocation2 + $0xa4] sm:$0xf]  ;;  %v1278_v43 = vld [vmem:[#allocation2 + $0xb0] sm:$0xf0] }
  0xbc   :  { %v1284_v44 = vld [vmem:[#allocation2 + $0xa8] sm:$0xf]  ;;  %400 = vmatpush.bf16.msra.mxu1 %v1293_v32  ;;  %v1277_v45 = vor.u32 %v1675_v40, %v1276_v39  ;;  %v1676_v46 = vld [vmem:[#allocation2 + $0xb4] sm:$0xf0]  ;;  %v1674_v47 = vld [vmem:[#allocation2 + $0xac] sm:$0xf]  ;;  %v1281_v49 = vor.u32 %v1673_v42, %v1278_v43 }
  0xbd   :  { %v1286_v48 = vld [vmem:[#allocation2 + $0xb8] sm:$0xf0]  ;;  %413 = vmatpush.bf16.msra.mxu2 %v1297_v33  ;;  %v1285_v50 = vor.u32 %v1676_v46, %v1284_v44  ;;  %v1260_v51 = vld [vmem:[#allocation2 + $0x80] sm:$0xf]  ;;  %v1671_v52 = vld [vmem:[#allocation2 + $0x8c] sm:$0xf0] }
  0xbe   :  { %426 = vmatpush.bf16.msra.mxu3 %v1301_v37  ;;  %v1669_v53 = vld [vmem:[#allocation2 + $0x84] sm:$0xf]  ;;  %439 = vmatpush.bf16.msrb.mxu0 %v1305_v41  ;;  %v1289_v54 = vor.u32 %v1674_v47, %v1286_v48  ;;  %v1262_v55 = vld [vmem:[#allocation2 + $0x90] sm:$0xf0]  ;;  %v1268_v56 = vld [vmem:[#allocation2 + $0x88] sm:$0xf]  ;;  %v1261_v60 = vor.u32 %v1671_v52, %v1260_v51 }
  0xbf   :  { %v1672_v57 = vld [vmem:[#allocation2 + $0x94] sm:$0xf0]  ;;  %v1670_v58 = vld [vmem:[#allocation2 + $0x8c] sm:$0xf]  ;;  %v1270_v59 = vld [vmem:[#allocation2 + $0x98] sm:$0xf0]  ;;  %v1265_v61 = vor.u32 %v1669_v53, %v1262_v55 }
  0xc0   :  { %401 = vmatpush.bf16.msra.mxu1 %v1277_v45  ;;  %v1269_v62 = vor.u32 %v1672_v57, %v1268_v56  ;;  %v1244_v63 = vld [vmem:[#allocation2 + $0x60] sm:$0xf]  ;;  %v1667_v0 = vld [vmem:[#allocation2 + $0x6c] sm:$0xf0]  ;;  %v1665_v1 = vld [vmem:[#allocation2 + $0x64] sm:$0xf]  ;;  %v1273_v2 = vor.u32 %v1670_v58, %v1270_v59  ;;  %v193_v45 = vpack.c.bf16 %v2018_v14, %v2018_v14 }
  0xc1   :  { %414 = vmatpush.bf16.msra.mxu2 %v1281_v49  ;;  %v1246_v3 = vld [vmem:[#allocation2 + $0x70] sm:$0xf0]  ;;  %v1252_v4 = vld [vmem:[#allocation2 + $0x68] sm:$0xf]  ;;  %v1668_v5 = vld [vmem:[#allocation2 + $0x74] sm:$0xf0]  ;;  %v1245_v8 = vor.u32 %v1667_v0, %v1244_v63 }
  0xc2   :  { %427 = vmatpush.bf16.msra.mxu3 %v1285_v50  ;;  %440 = vmatpush.bf16.msrb.mxu0 %v1289_v54  ;;  %v1666_v6 = vld [vmem:[#allocation2 + $0x6c] sm:$0xf]  ;;  %v1254_v7 = vld [vmem:[#allocation2 + $0x78] sm:$0xf0]  ;;  %v1249_v9 = vor.u32 %v1665_v1, %v1246_v3  ;;  %v1253_v10 = vor.u32 %v1668_v5, %v1252_v4  ;;  %v1228_v11 = vld [vmem:[#allocation2 + $0x40] sm:$0xf] }
  0xc3   :  { %v1663_v12 = vld [vmem:[#allocation2 + $0x4c] sm:$0xf0]  ;;  %v1661_v13 = vld [vmem:[#allocation2 + $0x44] sm:$0xf]  ;;  %v1257_v15 = vor.u32 %v1666_v6, %v1254_v7  ;;  %v1230_v16 = vld [vmem:[#allocation2 + $0x50] sm:$0xf0] }
  0xc4   :  { %402 = vmatpush.bf16.msra.mxu1 %v1261_v60  ;;  %v1236_v17 = vld [vmem:[#allocation2 + $0x48] sm:$0xf]  ;;  %v1664_v18 = vld [vmem:[#allocation2 + $0x54] sm:$0xf0]  ;;  %v1662_v19 = vld [vmem:[#allocation2 + $0x4c] sm:$0xf]  ;;  %v1229_v21 = vor.u32 %v1663_v12, %v1228_v11  ;;  %v1233_v22 = vor.u32 %v1661_v13, %v1230_v16 }
  0xc5   :  { %415 = vmatpush.bf16.msra.mxu2 %v1265_v61  ;;  %v1238_v20 = vld [vmem:[#allocation2 + $0x58] sm:$0xf0]  ;;  %v1237_v23 = vor.u32 %v1664_v18, %v1236_v17  ;;  %v1212_v24 = vld [vmem:[#allocation2 + $0x20] sm:$0xf]  ;;  %v1659_v25 = vld [vmem:[#allocation2 + $0x2c] sm:$0xf0] }
  0xc6   :  { %428 = vmatpush.bf16.msra.mxu3 %v1269_v62  ;;  %441 = vmatpush.bf16.msrb.mxu0 %v1273_v2  ;;  %v1657_v26 = vld [vmem:[#allocation2 + $0x24] sm:$0xf]  ;;  %v1241_v27 = vor.u32 %v1662_v19, %v1238_v20  ;;  %v1214_v28 = vld [vmem:[#allocation2 + $0x30] sm:$0xf0]  ;;  %v1220_v29 = vld [vmem:[#allocation2 + $0x28] sm:$0xf]  ;;  %v1213_v33 = vor.u32 %v1659_v25, %v1212_v24 }
  0xc7   :  { %v1660_v30 = vld [vmem:[#allocation2 + $0x34] sm:$0xf0]  ;;  %v1658_v31 = vld [vmem:[#allocation2 + $0x2c] sm:$0xf]  ;;  %v1222_v32 = vld [vmem:[#allocation2 + $0x38] sm:$0xf0]  ;;  %v1217_v34 = vor.u32 %v1657_v26, %v1214_v28 }
  0xc8   :  { %403 = vmatpush.bf16.msra.mxu1 %v1245_v8  ;;  %v1221_v35 = vor.u32 %v1660_v30, %v1220_v29  ;;  %v1196_v36 = vld [vmem:[#allocation2] sm:$0xf]  ;;  %v1655_v37 = vld [vmem:[#allocation2 + $0xc] sm:$0xf0]  ;;  %v1653_v38 = vld [vmem:[#allocation2 + $0x4] sm:$0xf]  ;;  %v1225_v39 = vor.u32 %v1658_v31, %v1222_v32 }
  0xc9   :  { %416 = vmatpush.bf16.msra.mxu2 %v1249_v9  ;;  %v1198_v40 = vld [vmem:[#allocation2 + $0x10] sm:$0xf0]  ;;  %v1204_v41 = vld [vmem:[#allocation2 + $0x8] sm:$0xf]  ;;  %v1656_v42 = vld [vmem:[#allocation2 + $0x14] sm:$0xf0]  ;;  %v1197_v46 = vor.u32 %v1655_v37, %v1196_v36 }
  0xca   :  { %429 = vmatpush.bf16.msra.mxu3 %v1253_v10  ;;  %442 = vmatpush.bf16.msrb.mxu0 %v1257_v15  ;;  %v1654_v43 = vld [vmem:[#allocation2 + $0xc] sm:$0xf]  ;;  %v1206_v44 = vld [vmem:[#allocation2 + $0x18] sm:$0xf0]  ;;  %v1201_v47 = vor.u32 %v1653_v38, %v1198_v40  ;;  %v1205_v48 = vor.u32 %v1656_v42, %v1204_v41  ;;  %v237_v50 = vrot.slane %v193_v45, 1 }
  0xcb   :  { %v1209_v49 = vor.u32 %v1654_v43, %v1206_v44  ;;  %v226_v51 = vld [vmem:[#allocation11 + $0x1] sm:$0xf] }
  0xcc   :  { %404 = vmatpush.bf16.msra.mxu1 %v1229_v21  ;;  %v228_v52 = vperm.slane %v226_v51, 0  ;;  %v231_v14 = vperm.slane %v226_v51, 3  ;;  %v229_v58 = vperm.slane %v226_v51, 1  ;;  %v230_v59 = vperm.slane %v226_v51, 2 }
  0xcd   :  { %417 = vmatpush.bf16.msra.mxu2 %v1233_v22 }
  0xce   :  { %430 = vmatpush.bf16.msra.mxu3 %v1237_v23  ;;  %443 = vmatpush.bf16.msrb.mxu0 %v1241_v27 }
  0xd0   :  { %405 = vmatpush.bf16.msra.mxu1 %v1213_v33 }
  0xd1   :  { %418 = vmatpush.bf16.msra.mxu2 %v1217_v34 }
  0xd2   :  { %431 = vmatpush.bf16.msra.mxu3 %v1221_v35  ;;  %444 = vmatpush.bf16.msrb.mxu0 %v1225_v39 }
  0xd4   :  { %406 = vmatpush.bf16.msra.mxu1 %v1197_v46 }
  0xd5   :  { %419 = vmatpush.bf16.msra.mxu2 %v1201_v47 }
  0xd6   :  { %432 = vmatpush.bf16.msra.mxu3 %v1205_v48  ;;  %445 = vmatpush.bf16.msrb.mxu0 %v1209_v49 }
  0xd7   :  { %407 = vmatmul.bf16.vlgmr.msra.gmra.mxu1 %v237_v50 }
  0xd8   :  { %420 = vmatmul.bf16.vlgmr.msra.gmra.mxu2 %v237_v50 }
  0xd9   :  { %433 = vmatmul.bf16.vlgmr.msra.gmra.mxu3 %v237_v50  ;;  %446 = vmatmul.bf16.vlgmr.msrb.gmra.mxu0 %v237_v50 }
 0x154   :  { %v408_v53 = vpop.f32.mrf.mxu1 }
 0x155   :  { %v2022_v54 = vadd.f32 %v408_v53, %v228_v52 }
 0x156   :  { %v447_v55 = vpop.f32.mrf.mxu0 }
 0x157   :  { %v451_v56 = vmax.f32 %v2022_v54, 0.0  ;;  %v2025_v57 = vadd.f32 %v447_v55, %v231_v14 }
 0x159   :  { %v454_v60 = vmax.f32 %v2025_v57, 0.0 }
 0x15b   :  { %v421_v61 = vpop.f32.mrf.mxu2 }
 0x15c   :  { %v434_v62 = vpop.f32.mrf.mxu3  ;;  %v2028_v63 = vadd.f32 %v421_v61, %v229_v58  ;;  %v410_v1 = vpop.f32.mrf.mxu1 }
 0x15d   :  { %v2030_v0 = vadd.f32 %v434_v62, %v230_v59 }
 0x15e   :  { %v452_v2 = vmax.f32 %v2028_v63, 0.0  ;;  %v449_v4 = vpop.f32.mrf.mxu0 }
 0x15f   :  { %v453_v3 = vmax.f32 %v2030_v0, 0.0 }
 0x163   :  { %v423_v5 = vpop.f32.mrf.mxu2 }
 0x164   :  { %v436_v6 = vpop.f32.mrf.mxu3 }
 0x165   :  { %1950 = dma.done.wait [#allocation5 + $0x1], 8192 }
 0x166   :  { %1951 = vsyncadd [#allocation5 + $0x1], 4294959104  ;;  %v1380_v7 = vld [vmem:[#allocation3 + $0x70] sm:$0xf]  ;;  %v1700_v8 = vld [vmem:[#allocation3 + $0x74] sm:$0xf0] }
 0x167   :  { %v1444_v9 = vld [vmem:[#allocation3 + $0xf0] sm:$0xf]  ;;  %v1381_v10 = vor.u32 %v1700_v8, %v1380_v7  ;;  %v1716_v11 = vld [vmem:[#allocation3 + $0xf4] sm:$0xf0]  ;;  %v1372_v19 = vld [vmem:[#allocation3 + $0x60] sm:$0xf] }
 0x168   :  { %v1508_v12 = vld [vmem:[#allocation3 + $0x170] sm:$0xf]  ;;  %v1732_v13 = vld [vmem:[#allocation3 + $0x174] sm:$0xf0]  ;;  %v1445_v15 = vor.u32 %v1716_v11, %v1444_v9  ;;  %v1698_v21 = vld [vmem:[#allocation3 + $0x64] sm:$0xf0] }
 0x169   :  { %v1509_v16 = vor.u32 %v1732_v13, %v1508_v12  ;;  %v1572_v17 = vld [vmem:[#allocation3 + $0x1f0] sm:$0xf]  ;;  %v1748_v18 = vld [vmem:[#allocation3 + $0x1f4] sm:$0xf0]  ;;  %853 = vmatpush.bf16.msrb.mxu1 %v1381_v10  ;;  %v1436_v22 = vld [vmem:[#allocation3 + $0xe0] sm:$0xf]  ;;  %v1373_v24 = vor.u32 %v1698_v21, %v1372_v19 }
 0x16a   :  { %v1573_v20 = vor.u32 %v1748_v18, %v1572_v17  ;;  %v1714_v23 = vld [vmem:[#allocation3 + $0xe4] sm:$0xf0]  ;;  %866 = vmatpush.bf16.msrb.mxu2 %v1445_v15  ;;  %v1500_v26 = vld [vmem:[#allocation3 + $0x160] sm:$0xf]  ;;  %v1364_v31 = vld [vmem:[#allocation3 + $0x50] sm:$0xf] }
 0x16b   :  { %879 = vmatpush.bf16.msrb.mxu3 %v1509_v16  ;;  %v1437_v25 = vor.u32 %v1714_v23, %v1436_v22  ;;  %v1730_v27 = vld [vmem:[#allocation3 + $0x164] sm:$0xf0]  ;;  %v1564_v28 = vld [vmem:[#allocation3 + $0x1e0] sm:$0xf]  ;;  %v1696_v32 = vld [vmem:[#allocation3 + $0x54] sm:$0xf0] }
 0x16c   :  { %892 = vmatpush.bf16.msra.mxu0 %v1573_v20  ;;  %v1501_v29 = vor.u32 %v1730_v27, %v1500_v26  ;;  %v1746_v30 = vld [vmem:[#allocation3 + $0x1e4] sm:$0xf0]  ;;  %v1428_v34 = vld [vmem:[#allocation3 + $0xd0] sm:$0xf]  ;;  %v1712_v35 = vld [vmem:[#allocation3 + $0xd4] sm:$0xf0]  ;;  %v1365_v37 = vor.u32 %v1696_v32, %v1364_v31 }
 0x16d   :  { %v1565_v33 = vor.u32 %v1746_v30, %v1564_v28  ;;  %v1492_v36 = vld [vmem:[#allocation3 + $0x150] sm:$0xf]  ;;  %854 = vmatpush.bf16.msrb.mxu1 %v1373_v24  ;;  %v1728_v38 = vld [vmem:[#allocation3 + $0x154] sm:$0xf0]  ;;  %v1429_v41 = vor.u32 %v1712_v35, %v1428_v34  ;;  %v1356_v43 = vld [vmem:[#allocation3 + $0x40] sm:$0xf] }
 0x16e   :  { %v1556_v39 = vld [vmem:[#allocation3 + $0x1d0] sm:$0xf]  ;;  %v1744_v40 = vld [vmem:[#allocation3 + $0x1d4] sm:$0xf0]  ;;  %867 = vmatpush.bf16.msrb.mxu2 %v1437_v25  ;;  %v1493_v42 = vor.u32 %v1728_v38, %v1492_v36  ;;  %v1694_v44 = vld [vmem:[#allocation3 + $0x44] sm:$0xf0] }
 0x16f   :  { %880 = vmatpush.bf16.msrb.mxu3 %v1501_v29  ;;  %v1420_v45 = vld [vmem:[#allocation3 + $0xc0] sm:$0xf]  ;;  %v1557_v46 = vor.u32 %v1744_v40, %v1556_v39  ;;  %v1710_v47 = vld [vmem:[#allocation3 + $0xc4] sm:$0xf0]  ;;  %v1357_v52 = vor.u32 %v1694_v44, %v1356_v43  ;;  %v1348_v55 = vld [vmem:[#allocation3 + $0x30] sm:$0xf] }
 0x170   :  { %893 = vmatpush.bf16.msra.mxu0 %v1565_v33  ;;  %v1484_v48 = vld [vmem:[#allocation3 + $0x140] sm:$0xf]  ;;  %v1726_v49 = vld [vmem:[#allocation3 + $0x144] sm:$0xf0]  ;;  %v1421_v14 = vor.u32 %v1710_v47, %v1420_v45  ;;  %v1692_v58 = vld [vmem:[#allocation3 + $0x34] sm:$0xf0] }
 0x171   :  { %v1548_v50 = vld [vmem:[#allocation3 + $0x1c0] sm:$0xf]  ;;  %v1742_v51 = vld [vmem:[#allocation3 + $0x1c4] sm:$0xf0]  ;;  %855 = vmatpush.bf16.msrb.mxu1 %v1365_v37  ;;  %v1485_v53 = vor.u32 %v1726_v49, %v1484_v48  ;;  %v1412_v59 = vld [vmem:[#allocation3 + $0xb0] sm:$0xf]  ;;  %v1349_v7 = vor.u32 %v1692_v58, %v1348_v55 }
 0x172   :  { %868 = vmatpush.bf16.msrb.mxu2 %v1429_v41  ;;  %v1549_v61 = vor.u32 %v1742_v51, %v1548_v50  ;;  %v1708_v62 = vld [vmem:[#allocation3 + $0xb4] sm:$0xf0]  ;;  %v1476_v1 = vld [vmem:[#allocation3 + $0x130] sm:$0xf]  ;;  %v1340_v10 = vld [vmem:[#allocation3 + $0x20] sm:$0xf] }
 0x173   :  { %881 = vmatpush.bf16.msrb.mxu3 %v1493_v42  ;;  %v1724_v4 = vld [vmem:[#allocation3 + $0x134] sm:$0xf0]  ;;  %v1540_v5 = vld [vmem:[#allocation3 + $0x1b0] sm:$0xf]  ;;  %v1413_v8 = vor.u32 %v1708_v62, %v1412_v59  ;;  %v1690_v11 = vld [vmem:[#allocation3 + $0x24] sm:$0xf0] }
 0x174   :  { %894 = vmatpush.bf16.msra.mxu0 %v1557_v46  ;;  %v1740_v6 = vld [vmem:[#allocation3 + $0x1b4] sm:$0xf0]  ;;  %v1477_v9 = vor.u32 %v1724_v4, %v1476_v1  ;;  %v1404_v12 = vld [vmem:[#allocation3 + $0xa0] sm:$0xf]  ;;  %v1706_v15 = vld [vmem:[#allocation3 + $0xa4] sm:$0xf0]  ;;  %v1341_v20 = vor.u32 %v1690_v11, %v1340_v10 }
 0x175   :  { %856 = vmatpush.bf16.msrb.mxu1 %v1357_v52  ;;  %v1541_v13 = vor.u32 %v1740_v6, %v1540_v5  ;;  %v1468_v16 = vld [vmem:[#allocation3 + $0x120] sm:$0xf]  ;;  %v1722_v17 = vld [vmem:[#allocation3 + $0x124] sm:$0xf0]  ;;  %v1405_v21 = vor.u32 %v1706_v15, %v1404_v12  ;;  %v1332_v23 = vld [vmem:[#allocation3 + $0x10] sm:$0xf]  ;;  %v2042_v12 = vpack.c.bf16 %v453_v3, %v453_v3 }
 0x176   :  { %869 = vmatpush.bf16.msrb.mxu2 %v1421_v14  ;;  %v1532_v18 = vld [vmem:[#allocation3 + $0x1a0] sm:$0xf]  ;;  %v1738_v19 = vld [vmem:[#allocation3 + $0x1a4] sm:$0xf0]  ;;  %v1469_v22 = vor.u32 %v1722_v17, %v1468_v16  ;;  %v1688_v24 = vld [vmem:[#allocation3 + $0x14] sm:$0xf0] }
 0x177   :  { %882 = vmatpush.bf16.msrb.mxu3 %v1485_v53  ;;  %v1396_v25 = vld [vmem:[#allocation3 + $0x90] sm:$0xf]  ;;  %v1533_v26 = vor.u32 %v1738_v19, %v1532_v18  ;;  %v1704_v27 = vld [vmem:[#allocation3 + $0x94] sm:$0xf0]  ;;  %v1333_v32 = vor.u32 %v1688_v24, %v1332_v23  ;;  %v1324_v33 = vld [vmem:[#allocation3] sm:$0xf] }
 0x178   :  { %895 = vmatpush.bf16.msra.mxu0 %v1549_v61  ;;  %v1460_v28 = vld [vmem:[#allocation3 + $0x110] sm:$0xf]  ;;  %v1720_v29 = vld [vmem:[#allocation3 + $0x114] sm:$0xf0]  ;;  %v1686_v34 = vld [vmem:[#allocation3 + $0x4] sm:$0xf0]  ;;  %v1397_v35 = vor.u32 %v1704_v27, %v1396_v25 }
 0x179   :  { %857 = vmatpush.bf16.msrb.mxu1 %v1349_v7  ;;  %v1524_v30 = vld [vmem:[#allocation3 + $0x190] sm:$0xf]  ;;  %v1736_v31 = vld [vmem:[#allocation3 + $0x194] sm:$0xf0]  ;;  %v1461_v36 = vor.u32 %v1720_v29, %v1460_v28  ;;  %v1388_v37 = vld [vmem:[#allocation3 + $0x80] sm:$0xf]  ;;  %v1325_v47 = vor.u32 %v1686_v34, %v1324_v33 }
 0x17a   :  { %870 = vmatpush.bf16.msrb.mxu2 %v1413_v8  ;;  %v1702_v38 = vld [vmem:[#allocation3 + $0x84] sm:$0xf0]  ;;  %v1452_v39 = vld [vmem:[#allocation3 + $0x100] sm:$0xf]  ;;  %v1525_v40 = vor.u32 %v1736_v31, %v1524_v30  ;;  %v1699_v44 = vld [vmem:[#allocation3 + $0x74] sm:$0xf] }
 0x17b   :  { %883 = vmatpush.bf16.msrb.mxu3 %v1477_v9  ;;  %v1718_v41 = vld [vmem:[#allocation3 + $0x104] sm:$0xf0]  ;;  %v1516_v42 = vld [vmem:[#allocation3 + $0x180] sm:$0xf]  ;;  %v1382_v45 = vld [vmem:[#allocation3 + $0x78] sm:$0xf0]  ;;  %v1389_v51 = vor.u32 %v1702_v38, %v1388_v37  ;;  %v2037_v9 = vpack.c.bf16 %v452_v2, %v452_v2  ;;  %v2052_v2 = vpack.c.bf16 %v454_v60, %v454_v60 }
 0x17c   :  { %896 = vmatpush.bf16.msra.mxu0 %v1541_v13  ;;  %v1734_v43 = vld [vmem:[#allocation3 + $0x184] sm:$0xf0]  ;;  %v1715_v46 = vld [vmem:[#allocation3 + $0xf4] sm:$0xf]  ;;  %v1446_v48 = vld [vmem:[#allocation3 + $0xf8] sm:$0xf0]  ;;  %v1453_v52 = vor.u32 %v1718_v41, %v1452_v39  ;;  %v1385_v58 = vor.u32 %v1699_v44, %v1382_v45  ;;  %v2047_v13 = vpack.c.bf16 %v451_v56, %v451_v56 }
 0x17d   :  { %858 = vmatpush.bf16.msrb.mxu1 %v1341_v20  ;;  %v1731_v49 = vld [vmem:[#allocation3 + $0x174] sm:$0xf]  ;;  %v1510_v50 = vld [vmem:[#allocation3 + $0x178] sm:$0xf0]  ;;  %v1517_v55 = vor.u32 %v1734_v43, %v1516_v42  ;;  %v1449_v59 = vor.u32 %v1715_v46, %v1446_v48  ;;  %v1697_v62 = vld [vmem:[#allocation3 + $0x64] sm:$0xf] }
 0x17e   :  { %871 = vmatpush.bf16.msrb.mxu2 %v1405_v21  ;;  %v1747_v14 = vld [vmem:[#allocation3 + $0x1f4] sm:$0xf]  ;;  %v1574_v53 = vld [vmem:[#allocation3 + $0x1f8] sm:$0xf0]  ;;  %v1513_v61 = vor.u32 %v1731_v49, %v1510_v50  ;;  %v1374_v1 = vld [vmem:[#allocation3 + $0x68] sm:$0xf0] }
 0x17f   :  { %884 = vmatpush.bf16.msrb.mxu3 %v1469_v22  ;;  %v1713_v4 = vld [vmem:[#allocation3 + $0xe4] sm:$0xf]  ;;  %v1577_v5 = vor.u32 %v1747_v14, %v1574_v53  ;;  %v1438_v6 = vld [vmem:[#allocation3 + $0xe8] sm:$0xf0]  ;;  %v1377_v63 = vor.u32 %v1697_v62, %v1374_v1  ;;  %v1695_v16 = vld [vmem:[#allocation3 + $0x54] sm:$0xf] }
 0x180   :  { %897 = vmatpush.bf16.msra.mxu0 %v1533_v26  ;;  %v1729_v7 = vld [vmem:[#allocation3 + $0x164] sm:$0xf]  ;;  %v1502_v8 = vld [vmem:[#allocation3 + $0x168] sm:$0xf0]  ;;  %v1441_v15 = vor.u32 %v1713_v4, %v1438_v6  ;;  %v1366_v3 = vld [vmem:[#allocation3 + $0x58] sm:$0xf0] }
 0x181   :  { %859 = vmatpush.bf16.msrb.mxu1 %v1333_v32  ;;  %v1745_v10 = vld [vmem:[#allocation3 + $0x1e4] sm:$0xf]  ;;  %v1566_v11 = vld [vmem:[#allocation3 + $0x1e8] sm:$0xf0]  ;;  %v1505_v0 = vor.u32 %v1729_v7, %v1502_v8  ;;  %v1711_v17 = vld [vmem:[#allocation3 + $0xd4] sm:$0xf]  ;;  %v1369_v60 = vor.u32 %v1695_v16, %v1366_v3 }
 0x182   :  { %872 = vmatpush.bf16.msrb.mxu2 %v1397_v35  ;;  %v1569_v54 = vor.u32 %v1745_v10, %v1566_v11  ;;  %v1430_v56 = vld [vmem:[#allocation3 + $0xd8] sm:$0xf0]  ;;  %v1727_v18 = vld [vmem:[#allocation3 + $0x154] sm:$0xf]  ;;  %v1693_v23 = vld [vmem:[#allocation3 + $0x44] sm:$0xf] }
 0x183   :  { %885 = vmatpush.bf16.msrb.mxu3 %v1461_v36  ;;  %v1494_v19 = vld [vmem:[#allocation3 + $0x158] sm:$0xf0]  ;;  %v1743_v57 = vld [vmem:[#allocation3 + $0x1d4] sm:$0xf]  ;;  %v1433_v21 = vor.u32 %v1711_v17, %v1430_v56  ;;  %v1358_v24 = vld [vmem:[#allocation3 + $0x48] sm:$0xf0] }
 0x184   :  { %898 = vmatpush.bf16.msra.mxu0 %v1525_v40  ;;  %v1558_v20 = vld [vmem:[#allocation3 + $0x1d8] sm:$0xf0]  ;;  %v1497_v22 = vor.u32 %v1727_v18, %v1494_v19  ;;  %v1709_v25 = vld [vmem:[#allocation3 + $0xc4] sm:$0xf]  ;;  %v1422_v27 = vld [vmem:[#allocation3 + $0xc8] sm:$0xf0]  ;;  %v1361_v32 = vor.u32 %v1693_v23, %v1358_v24 }
 0x185   :  { %860 = vmatpush.bf16.msrb.mxu1 %v1325_v47  ;;  %v1561_v26 = vor.u32 %v1743_v57, %v1558_v20  ;;  %v1725_v28 = vld [vmem:[#allocation3 + $0x144] sm:$0xf]  ;;  %v1486_v29 = vld [vmem:[#allocation3 + $0x148] sm:$0xf0]  ;;  %v1425_v33 = vor.u32 %v1709_v25, %v1422_v27  ;;  %v1691_v35 = vld [vmem:[#allocation3 + $0x34] sm:$0xf] }
 0x186   :  { %873 = vmatpush.bf16.msrb.mxu2 %v1389_v51  ;;  %v1741_v30 = vld [vmem:[#allocation3 + $0x1c4] sm:$0xf]  ;;  %v1550_v31 = vld [vmem:[#allocation3 + $0x1c8] sm:$0xf0]  ;;  %v1489_v34 = vor.u32 %v1725_v28, %v1486_v29  ;;  %v1350_v36 = vld [vmem:[#allocation3 + $0x38] sm:$0xf0] }
 0x187   :  { %886 = vmatpush.bf16.msrb.mxu3 %v1453_v52  ;;  %v1707_v37 = vld [vmem:[#allocation3 + $0xb4] sm:$0xf]  ;;  %v1553_v38 = vor.u32 %v1741_v30, %v1550_v31  ;;  %v1414_v39 = vld [vmem:[#allocation3 + $0xb8] sm:$0xf0]  ;;  %v1353_v44 = vor.u32 %v1691_v35, %v1350_v36  ;;  %v1689_v47 = vld [vmem:[#allocation3 + $0x24] sm:$0xf] }
 0x188   :  { %899 = vmatpush.bf16.msra.mxu0 %v1517_v55  ;;  %861 = vmatmul.bf16.vlgmr.msrb.gmra.mxu1 %v2047_v13  ;;  %v1723_v40 = vld [vmem:[#allocation3 + $0x134] sm:$0xf]  ;;  %v1478_v41 = vld [vmem:[#allocation3 + $0x138] sm:$0xf0]  ;;  %v1417_v45 = vor.u32 %v1707_v37, %v1414_v39  ;;  %v1342_v48 = vld [vmem:[#allocation3 + $0x28] sm:$0xf0] }
 0x189   :  { %905 = vmatpush.bf16.msra.mxu1 %v1385_v58  ;;  %874 = vmatmul.bf16.vlgmr.msrb.gmra.mxu2 %v2037_v9  ;;  %v1739_v42 = vld [vmem:[#allocation3 + $0x1b4] sm:$0xf]  ;;  %v1542_v43 = vld [vmem:[#allocation3 + $0x1b8] sm:$0xf0]  ;;  %v1481_v46 = vor.u32 %v1723_v40, %v1478_v41  ;;  %v1705_v49 = vld [vmem:[#allocation3 + $0xa4] sm:$0xf]  ;;  %v1345_v58 = vor.u32 %v1689_v47, %v1342_v48 }
 0x18a   :  { %918 = vmatpush.bf16.msra.mxu2 %v1449_v59  ;;  %887 = vmatmul.bf16.vlgmr.msrb.gmra.mxu3 %v2042_v12  ;;  %v1545_v50 = vor.u32 %v1739_v42, %v1542_v43  ;;  %v1406_v51 = vld [vmem:[#allocation3 + $0xa8] sm:$0xf0]  ;;  %v1721_v52 = vld [vmem:[#allocation3 + $0x124] sm:$0xf]  ;;  %v1687_v62 = vld [vmem:[#allocation3 + $0x14] sm:$0xf] }
 0x18b   :  { %931 = vmatpush.bf16.msra.mxu3 %v1513_v61  ;;  %900 = vmatmul.bf16.vlgmr.msra.gmra.mxu0 %v2052_v2  ;;  %v1470_v14 = vld [vmem:[#allocation3 + $0x128] sm:$0xf0]  ;;  %v1737_v53 = vld [vmem:[#allocation3 + $0x1a4] sm:$0xf]  ;;  %v1409_v59 = vor.u32 %v1705_v49, %v1406_v51  ;;  %v1334_v1 = vld [vmem:[#allocation3 + $0x18] sm:$0xf0] }
 0x18c   :  { %944 = vmatpush.bf16.msrb.mxu0 %v1577_v5  ;;  %v1534_v55 = vld [vmem:[#allocation3 + $0x1a8] sm:$0xf0]  ;;  %v1473_v61 = vor.u32 %v1721_v52, %v1470_v14  ;;  %v1703_v4 = vld [vmem:[#allocation3 + $0x94] sm:$0xf]  ;;  %v1398_v6 = vld [vmem:[#allocation3 + $0x98] sm:$0xf0] }
 0x18d   :  { %906 = vmatpush.bf16.msra.mxu1 %v1377_v63  ;;  %v1537_v5 = vor.u32 %v1737_v53, %v1534_v55  ;;  %v1719_v7 = vld [vmem:[#allocation3 + $0x114] sm:$0xf]  ;;  %v1462_v8 = vld [vmem:[#allocation3 + $0x118] sm:$0xf0]  ;;  %v1337_v63 = vor.u32 %v1687_v62, %v1334_v1  ;;  %v1685_v16 = vld [vmem:[#allocation3 + $0x4] sm:$0xf] }
 0x18e   :  { %919 = vmatpush.bf16.msra.mxu2 %v1441_v15  ;;  %v1735_v10 = vld [vmem:[#allocation3 + $0x194] sm:$0xf]  ;;  %v1526_v11 = vld [vmem:[#allocation3 + $0x198] sm:$0xf0]  ;;  %v1401_v15 = vor.u32 %v1703_v4, %v1398_v6  ;;  %v1326_v3 = vld [vmem:[#allocation3 + $0x8] sm:$0xf0] }
 0x18f   :  { %932 = vmatpush.bf16.msra.mxu3 %v1505_v0  ;;  %v1465_v0 = vor.u32 %v1719_v7, %v1462_v8  ;;  %v1701_v17 = vld [vmem:[#allocation3 + $0x84] sm:$0xf]  ;;  %v1390_v56 = vld [vmem:[#allocation3 + $0x88] sm:$0xf0] }
 0x190   :  { %945 = vmatpush.bf16.msrb.mxu0 %v1569_v54  ;;  %v1529_v54 = vor.u32 %v1735_v10, %v1526_v11  ;;  %v1717_v18 = vld [vmem:[#allocation3 + $0x104] sm:$0xf]  ;;  %v1454_v19 = vld [vmem:[#allocation3 + $0x108] sm:$0xf0] }
 0x191   :  { %907 = vmatpush.bf16.msra.mxu1 %v1369_v60  ;;  %v1733_v57 = vld [vmem:[#allocation3 + $0x184] sm:$0xf]  ;;  %v1518_v20 = vld [vmem:[#allocation3 + $0x188] sm:$0xf0]  ;;  %v1329_v60 = vor.u32 %v1685_v16, %v1326_v3 }
 0x192   :  { %920 = vmatpush.bf16.msra.mxu2 %v1433_v21  ;;  %v1393_v21 = vor.u32 %v1701_v17, %v1390_v56  ;;  %v1521_v23 = vor.u32 %v1733_v57, %v1518_v20  ;;  %v527_v24 = vld [vmem:[#allocation11 + $0x5] sm:$0x3] }
 0x193   :  { %933 = vmatpush.bf16.msra.mxu3 %v1497_v22  ;;  %v1457_v22 = vor.u32 %v1717_v18, %v1454_v19  ;;  %v529_v25 = vperm.slane %v527_v24, 0 }
 0x194   :  { %946 = vmatpush.bf16.msrb.mxu0 %v1561_v26 }
 0x195   :  { %908 = vmatpush.bf16.msra.mxu1 %v1361_v32 }
 0x196   :  { %921 = vmatpush.bf16.msra.mxu2 %v1425_v33 }
 0x197   :  { %934 = vmatpush.bf16.msra.mxu3 %v1489_v34 }
 0x198   :  { %947 = vmatpush.bf16.msrb.mxu0 %v1553_v38 }
 0x199   :  { %909 = vmatpush.bf16.msra.mxu1 %v1353_v44 }
 0x19a   :  { %922 = vmatpush.bf16.msra.mxu2 %v1417_v45 }
 0x19b   :  { %935 = vmatpush.bf16.msra.mxu3 %v1481_v46 }
 0x19c   :  { %948 = vmatpush.bf16.msrb.mxu0 %v1545_v50 }
 0x19d   :  { %910 = vmatpush.bf16.msra.mxu1 %v1345_v58 }
 0x19e   :  { %923 = vmatpush.bf16.msra.mxu2 %v1409_v59 }
 0x19f   :  { %936 = vmatpush.bf16.msra.mxu3 %v1473_v61 }
 0x1a0   :  { %949 = vmatpush.bf16.msrb.mxu0 %v1537_v5 }
 0x1a1   :  { %911 = vmatpush.bf16.msra.mxu1 %v1337_v63 }
 0x1a2   :  { %924 = vmatpush.bf16.msra.mxu2 %v1401_v15 }
 0x1a3   :  { %937 = vmatpush.bf16.msra.mxu3 %v1465_v0 }
 0x1a4   :  { %950 = vmatpush.bf16.msrb.mxu0 %v1529_v54 }
 0x1a5   :  { %912 = vmatpush.bf16.msra.mxu1 %v1329_v60 }
 0x1a6   :  { %925 = vmatpush.bf16.msra.mxu2 %v1393_v21 }
 0x1a7   :  { %938 = vmatpush.bf16.msra.mxu3 %v1457_v22 }
 0x1a8   :  { %951 = vmatpush.bf16.msrb.mxu0 %v1521_v23  ;;  %913 = vmatmul.bf16.vlgmr.msra.gmra.mxu1 %v2047_v13 }
 0x1a9   :  { %926 = vmatmul.bf16.vlgmr.msra.gmra.mxu2 %v2037_v9  ;;  %v530_v9 = vperm.slane %v527_v24, 1 }
 0x1aa   :  { %939 = vmatmul.bf16.vlgmr.msra.gmra.mxu3 %v2042_v12 }
 0x1ab   :  { %952 = vmatmul.bf16.vlgmr.msrb.gmra.mxu0 %v2052_v2 }
 0x205   :  { %v862_v26 = vpop.f32.mrf.mxu1 }
 0x206   :  { %v863_v28 = vadd.f32 %v862_v26, %v529_v25 }
 0x208   :  { %v901_v27 = vpop.f32.mrf.mxu0 }
 0x20c   :  { %v875_v29 = vpop.f32.mrf.mxu2 }
 0x20d   :  { %v876_v30 = vadd.f32 %v875_v29, %v863_v28  ;;  %v888_v31 = vpop.f32.mrf.mxu3  ;;  %v864_v33 = vpop.f32.mrf.mxu1 }
 0x20f   :  { %v889_v32 = vadd.f32 %v888_v31, %v876_v30 }
 0x210   :  { %v903_v34 = vpop.f32.mrf.mxu0 }
 0x211   :  { %v902_v35 = vadd.f32 %v901_v27, %v889_v32 }
 0x213   :  { %v957_v36 = vmax.f32 %v902_v35, 0.0 }
 0x214   :  { %v877_v13 = vpop.f32.mrf.mxu2 }
 0x215   :  { %v890_v37 = vpop.f32.mrf.mxu3 }
 0x225   :  { %v914_v38 = vpop.f32.mrf.mxu1 }
 0x226   :  { %v915_v39 = vadd.f32 %v914_v38, %v530_v9 }
 0x228   :  { %v953_v12 = vpop.f32.mrf.mxu0 }
 0x22c   :  { %v927_v2 = vpop.f32.mrf.mxu2 }
 0x22d   :  { %v940_v40 = vpop.f32.mrf.mxu3  ;;  %v928_v41 = vadd.f32 %v927_v2, %v915_v39  ;;  %v916_v42 = vpop.f32.mrf.mxu1 }
 0x22f   :  { %v941_v43 = vadd.f32 %v940_v40, %v928_v41 }
 0x230   :  { %v955_v44 = vpop.f32.mrf.mxu0 }
 0x231   :  { %v954_v45 = vadd.f32 %v953_v12, %v941_v43 }
 0x233   :  { %v958_v46 = vmax.f32 %v954_v45, 0.0 }
 0x234   :  { %v929_v47 = vpop.f32.mrf.mxu2 }
 0x235   :  { %v942_v48 = vpop.f32.mrf.mxu3 }
 0x236   :  { %1952 = dma.done.wait [#allocation5 + $0x2], 2048 }
 0x237   :  { %1953 = vsyncadd [#allocation5 + $0x2], 4294965248  ;;  %v1756_v49 = vld [vmem:[#allocation4 + $0x38] sm:$0xff]  ;;  %v1755_v51 = vld [vmem:[#allocation4 + $0x30] sm:$0xff]  ;;  %v963_v8 = vpack.c.bf16 %v957_v36, %v957_v36  ;;  %v964_v10 = vpack.c.bf16 %v958_v46, %v958_v46  ;;  %s1964_s4 = smov [#allocation12]   ;;  %s1131_s27 = sshll.u32 %s2071_s6, 4  ;;  %s1132_s27 = int_to_ptr.hbm [resolvable:$true] %s1131_s27 }
 0x238   :  { %v1764_v50 = vld [vmem:[#allocation4 + $0x78] sm:$0xff]  ;;  %1097 = vmatpush.bf16.msrb.mxu1 %v1756_v49  ;;  %v1763_v52 = vld [vmem:[#allocation4 + $0x70] sm:$0xff]  ;;  %v1754_v14 = vld [vmem:[#allocation4 + $0x28] sm:$0xff]  ;;  %s1129_s5 = sshll.u32 %s1964_s4, 4  ;;  %s1130_s5 = int_to_ptr.vmem [resolvable:$true] %s1129_s5 }
 0x239   :  { %1110 = vmatpush.bf16.msrb.mxu2 %v1764_v50  ;;  %v1762_v53 = vld [vmem:[#allocation4 + $0x68] sm:$0xff]  ;;  %v1753_v55 = vld [vmem:[#allocation4 + $0x20] sm:$0xff]  ;;  %v1752_v59 = vld [vmem:[#allocation4 + $0x18] sm:$0xff] }
 0x23a   :  { %v1761_v58 = vld [vmem:[#allocation4 + $0x60] sm:$0xff]  ;;  %v1760_v61 = vld [vmem:[#allocation4 + $0x58] sm:$0xff]  ;;  %v1751_v62 = vld [vmem:[#allocation4 + $0x10] sm:$0xff] }
 0x23b   :  { %v1759_v1 = vld [vmem:[#allocation4 + $0x50] sm:$0xff]  ;;  %v1750_v4 = vld [vmem:[#allocation4 + $0x8] sm:$0xff]  ;;  %v1749_v6 = vld [vmem:[#allocation4] sm:$0xff] }
 0x23c   :  { %1098 = vmatpush.bf16.msrb.mxu1 %v1755_v51  ;;  %v1758_v5 = vld [vmem:[#allocation4 + $0x48] sm:$0xff]  ;;  %v1757_v7 = vld [vmem:[#allocation4 + $0x40] sm:$0xff] }
 0x23d   :  { %1111 = vmatpush.bf16.msrb.mxu2 %v1763_v52  ;;  %v1775_v11 = vld [vmem:[#allocation11 + $0x7] ss:$0 sm:$0xff] }
 0x240   :  { %1099 = vmatpush.bf16.msrb.mxu1 %v1754_v14 }
 0x241   :  { %1112 = vmatpush.bf16.msrb.mxu2 %v1762_v53 }
 0x244   :  { %1100 = vmatpush.bf16.msrb.mxu1 %v1753_v55 }
 0x245   :  { %1113 = vmatpush.bf16.msrb.mxu2 %v1761_v58 }
 0x248   :  { %1101 = vmatpush.bf16.msrb.mxu1 %v1752_v59 }
 0x249   :  { %1114 = vmatpush.bf16.msrb.mxu2 %v1760_v61 }
 0x24c   :  { %1102 = vmatpush.bf16.msrb.mxu1 %v1751_v62 }
 0x24d   :  { %1115 = vmatpush.bf16.msrb.mxu2 %v1759_v1 }
 0x250   :  { %1103 = vmatpush.bf16.msrb.mxu1 %v1750_v4 }
 0x251   :  { %1116 = vmatpush.bf16.msrb.mxu2 %v1758_v5 }
 0x254   :  { %1104 = vmatpush.bf16.msrb.mxu1 %v1749_v6 }
 0x255   :  { %1117 = vmatpush.bf16.msrb.mxu2 %v1757_v7 }
 0x257   :  { %1105 = vmatmul.bf16.vlgmr.msrb.gmra.mxu1 %v963_v8 }
 0x258   :  { %1118 = vmatmul.bf16.vlgmr.msrb.gmra.mxu2 %v964_v10 }
 0x2d4   :  { %v1106_v63 = vpop.f32.mrf.mxu1 }
 0x2d5   :  { %v1107_v15 = vadd.f32 %v1775_v11, %v1106_v63 }
 0x2db   :  { %v1119_v0 = vpop.f32.mrf.mxu2 }
 0x2dc   :  { %v1120_v16 = vadd.f32 %v1119_v0, %v1107_v15  ;;  %v1108_v3 = vpop.f32.mrf.mxu1 }
 0x2de   :  { %1123 = vst [vmem:[#allocation12] sm:$0x3] %v1120_v16 }
 0x2df   :  { %1134 = dma.vmem_to_hbm [thread:$0]  %s1130_s5, 32, %s1132_s27, [#allocation8]  }
 0x2e3   :  { %v1121_v17 = vpop.f32.mrf.mxu2 }
 0x2e4   :  { %1954 = dma.done.wait [#allocation8], 32  }
 0x2e5   :  { %1955 = vsyncadd [#allocation8], 4294967264 }
 0x2e6   :  { %1139 = vsyncpa [#allocation7], 1 }
 0x2e7   :  { %1140 = vsyncpa [#allocation10], 1 }
 0x2e8   :  { %1141 = vsyncpa [#allocation8], 1 }
 0x2e9   :  { %1142 = vsyncmov [#allocation5] }
 0x2ec   :  { %s1143_s28 = vpop.sfrf %1142 }
 0x2ed   :  { %p1642_p0 = scmp.ne.s32.totalorder %s1143_s28, 0 }
 0x2ef   :  { %1147 = shalt.err (%p1642_p0)  }
 0x2f0   :  { %1149 = vsyncmov [#allocation5 + $0x1] }
 0x2f3   :  { %s1150_s29 = vpop.sfrf %1149 }
 0x2f4   :  { %p1643_p1 = scmp.ne.s32.totalorder %s1150_s29, 0 }
 0x2f6   :  { %1154 = shalt.err (%p1643_p1)  }
 0x2f7   :  { %1156 = vsyncmov [#allocation5 + $0x2] }
 0x2fa   :  { %s1157_s6 = vpop.sfrf %1156 }
 0x2fb   :  { %p1644_p2 = scmp.ne.s32.totalorder %s1157_s6, 0 }
 0x2fd   :  { %1161 = shalt.err (%p1644_p2)  }

</bundles_post_ra>
